<compile_context>
chip_gen: v7x
topology: tpu7x:2x2x1
jax: 0.10.0
libtpu: 0.0.40
codegen_flags: <defaults>
</compile_context>

<pallas_src>
import functools

import jax
import jax.numpy as jnp
import numpy as np
from jax.experimental import pallas as pl
from jax.experimental.pallas import tpu as pltpu

NUM_LABELS_PER_CATEGORY = (3, 3, 2, 3, 3, 3, 3)
TOTAL_LABELS = sum(NUM_LABELS_PER_CATEGORY)      # 20
T_PAD = 128                                      # lane-dense padded head dimension
_PAD_BIAS = -1e9                                 # padded-column logit -> softmax weight 0


def _head_offsets():
    offs, start = [], 0
    for n in NUM_LABELS_PER_CATEGORY:
        offs.append((start, n))
        start += n
    return tuple(offs)


HEAD_OFFSETS = _head_offsets()


def _round_up(x, m):
    return (x + m - 1) // m * m


def _segment_matrix():
    """(128,128) block-diagonal 0/1 matrix: e @ S gives per-head softmax denominators."""
    s = np.zeros((T_PAD, T_PAD), np.float32)
    for off, n in HEAD_OFFSETS:
        s[off:off + n, off:off + n] = 1.0
    for k in range(TOTAL_LABELS, T_PAD):         # identity on padded columns
        s[k, k] = 1.0
    return s


def _column_loss_weights(batch):
    """Per-column BCE weight: 1/(batch*n_head) on real columns, 0 on padding."""
    w = np.zeros((1, T_PAD), np.float32)
    for off, n in HEAD_OFFSETS:
        w[0, off:off + n] = 1.0 / (batch * n)
    return w


def _physical_vmem_bytes():
    try:
        return int(pltpu.get_tpu_info().vmem_capacity_bytes)
    except Exception:
        return 64 << 20                          # conservative fallback (v7x-sized)


def _classifier_kernel(x_ref, wd_ref, bd_ref, wo_ref, bo_ref, seg_ref, *rest,
                       with_loss, n_valid, block_rows):
    if with_loss:
        lab_ref, colw_ref, prob_ref, loss_ref = rest
    else:
        (prob_ref,) = rest

    # --- dense -> tanh -> concatenated head projection (bf16 MXU, f32 accumulate) ---
    x = x_ref[...].astype(wd_ref.dtype)
    h = jnp.tanh(
        jnp.dot(x, wd_ref[...], preferred_element_type=jnp.float32) + bd_ref[...])
    logits = (jnp.dot(h.astype(wo_ref.dtype), wo_ref[...],
                      preferred_element_type=jnp.float32) + bo_ref[...])
    # Padded columns carry a -1e9 bias -> exp() == 0 -> softmax prob exactly 0, and the
    # single row-max below is automatically the max over real columns only.

    # --- per-head softmax: 1 row-max + 1 exp pass + 1 MXU segment-sum ---------------
    m = jnp.max(logits, axis=-1, keepdims=True)
    e = jnp.exp(logits - m)
    denom = jnp.dot(e, seg_ref[...], preferred_element_type=jnp.float32)
    denom = jnp.maximum(denom, 1e-37)            # guard pathological underflow (no NaN)
    r0 = pl.reciprocal(denom, approx=True)       # EUP slot (free next to VPU work)
    recip = r0 * (2.0 - denom * r0)              # one Newton step -> ~f32 accuracy
    prob_ref[...] = e * recip

    # --- fused BCEWithLogitsLoss (training path): logits never hit HBM ---------------
    if with_loss:
        z = logits
        y = lab_ref[...]
        bce = jnp.maximum(z, 0.0) - z * y + jnp.log(1.0 + jnp.exp(-jnp.abs(z)))
        row = (pl.program_id(0) * block_rows
               + jax.lax.broadcasted_iota(jnp.int32, (block_rows, 1), 0))
        row_valid = (row < n_valid).astype(jnp.float32)
        part = jnp.sum(bce * row_valid * colw_ref[...], axis=0, keepdims=True)  # (1,128)
        # Spread over 8 sublanes (divided by 8) so the partial-loss output block is a
        # legal (8,128) tile; the host-side jnp.sum recovers the exact total.
        loss_ref[...] = jnp.broadcast_to(part * 0.125, (8, T_PAD))


@functools.partial(jax.jit, static_argnames=("use_bf16",))
def _run_classifier(features, wd, bd, wo, bo, labels_cat=None, *, use_bf16=True):
    """Dense -> tanh -> 7 heads -> per-head softmax (+ optional fused BCE loss)."""
    with_loss = labels_cat is not None
    n, d_in = features.shape
    hidden = wd.shape[-1]

    mm_dtype = jnp.bfloat16 if use_bf16 else jnp.float32
    mm_bytes = 2 if use_bf16 else 4
    x_bytes = jnp.dtype(features.dtype).itemsize

    # Matmul operands in the MXU dtype; biases stay f32 (added after the f32 accumulate).
    wd_c = wd.astype(mm_dtype)
    bd_c = bd.reshape(1, hidden).astype(jnp.float32)
    wo_p = (jnp.zeros((hidden, T_PAD), jnp.float32)
            .at[:, :TOTAL_LABELS].set(wo.astype(jnp.float32)).astype(mm_dtype))
    bo_p = (jnp.full((1, T_PAD), _PAD_BIAS, jnp.float32)
            .at[:, :TOTAL_LABELS].set(bo.reshape(1, TOTAL_LABELS).astype(jnp.float32)))
    seg = jnp.asarray(_segment_matrix())

    # ---- tile selection (per-generation VMEM budget) --------------------------------
    phys = _physical_vmem_bytes()
    budget = int(phys * 0.55)
    # Resident (constant-index) blocks are double-buffered by default -> count twice.
    resident_bytes = 2 * (d_in * hidden * mm_bytes + hidden * T_PAD * mm_bytes
                          + 4 * (hidden + 2 * T_PAD) + 4 * T_PAD * T_PAD
                          + (4 * T_PAD if with_loss else 0))
    per_row_io = x_bytes * d_in + 4 * T_PAD + (4 * T_PAD if with_loss else 0)
    per_row_scr = 4 * hidden + (10 if with_loss else 7) * 4 * T_PAD

    n8 = max(_round_up(n, 8), 8)
    block_rows = 8
    for cand in (2048, 1024, 512, 256, 128, 64, 32, 16, 8):
        if resident_bytes + 2 * cand * per_row_io + cand * per_row_scr + (2 << 20) <= budget:
            block_rows = cand
            break
    block_rows = min(block_rows, n8)
    if n8 >= 16:                                 # >=2 grid steps -> both v7x TCs busy
        block_rows = min(block_rows, max((n8 // 2) // 8 * 8, 8))
    n_pad = _round_up(n8, block_rows)
    grid = (n_pad // block_rows,)

    est = (resident_bytes + 2 * block_rows * per_row_io
           + block_rows * per_row_scr + (4 << 20))
    vmem_limit = int(min(phys * 9 // 10, max(32 << 20, est)))

    # ---- operand padding -------------------------------------------------------------
    x = features                                  # dtype cast happens inside the kernel
    if n_pad != n:
        x = jnp.zeros((n_pad, d_in), x.dtype).at[:n, :].set(x)

    kernel = functools.partial(_classifier_kernel, with_loss=with_loss,
                               n_valid=n, block_rows=block_rows)

    resident = lambda a: pl.BlockSpec(a.shape, lambda i: (0,) * a.ndim)  # VMEM-resident
    x_spec = pl.BlockSpec((block_rows, d_in), lambda i: (i, 0))
    prob_spec = pl.BlockSpec((block_rows, T_PAD), lambda i: (i, 0))

    in_specs = [x_spec, resident(wd_c), resident(bd_c), resident(wo_p),
                resident(bo_p), resident(seg)]
    operands = [x, wd_c, bd_c, wo_p, bo_p, seg]
    out_shape = jax.ShapeDtypeStruct((n_pad, T_PAD), jnp.float32)
    out_specs = prob_spec

    if with_loss:
        lab = (jnp.zeros((n_pad, T_PAD), jnp.float32)
               .at[:n, :TOTAL_LABELS].set(labels_cat.astype(jnp.float32)))
        colw = jnp.asarray(_column_loss_weights(n))
        in_specs += [pl.BlockSpec((block_rows, T_PAD), lambda i: (i, 0)), resident(colw)]
        operands += [lab, colw]
        out_shape = (out_shape,
                     jax.ShapeDtypeStruct((grid[0] * 8, T_PAD), jnp.float32))
        out_specs = (prob_spec, pl.BlockSpec((8, T_PAD), lambda i: (i, 0)))

    result = pl.pallas_call(
        kernel,
        out_shape=out_shape,
        grid=grid,
        in_specs=in_specs,
        out_specs=out_specs,
        compiler_params=pltpu.CompilerParams(
            dimension_semantics=("parallel",),
            vmem_limit_bytes=vmem_limit,
        ),
    )(*operands)

    if with_loss:
        prob_p, loss_part = result
        return prob_p[:n, :TOTAL_LABELS], jnp.sum(loss_part)
    return result[:n, :TOTAL_LABELS]


def init_params(key, input_size, hidden_size):
    """Deterministic nn.Linear-style init (uniform +-1/sqrt(fan_in))."""
    kd_w, kd_b, ko_w, ko_b = jax.random.split(key, 4)
    lim_d = 1.0 / jnp.sqrt(jnp.float32(input_size))
    wd = jax.random.uniform(kd_w, (input_size, hidden_size), jnp.float32, -lim_d, lim_d)
    bd = jax.random.uniform(kd_b, (1, hidden_size), jnp.float32, -lim_d, lim_d)
    lim_o = 1.0 / jnp.sqrt(jnp.float32(hidden_size))
    wo = jax.random.uniform(ko_w, (hidden_size, TOTAL_LABELS), jnp.float32, -lim_o, lim_o)
    bo = jax.random.uniform(ko_b, (1, TOTAL_LABELS), jnp.float32, -lim_o, lim_o)
    return dict(wd=wd, bd=bd, wo=wo, bo=bo)


def model_forward(features, params, labels_list=None, use_bf16=True):
    """Mirrors Model.forward downstream of the encoder output `features` ([N, D_in])."""
    if labels_list is None:
        prob_cat = _run_classifier(features, params["wd"], params["bd"],
                                   params["wo"], params["bo"], use_bf16=use_bf16)
        return [prob_cat[:, off:off + nh] for off, nh in HEAD_OFFSETS]

    labels_cat = jnp.concatenate(
        [y.reshape(-1, nh).astype(jnp.float32)
         for y, (_, nh) in zip(labels_list, HEAD_OFFSETS)], axis=-1)
    prob_cat, loss = _run_classifier(features, params["wd"], params["bd"],
                                     params["wo"], params["bo"], labels_cat,
                                     use_bf16=use_bf16)
    prob = [prob_cat[:, off:off + nh] for off, nh in HEAD_OFFSETS]
    return loss, prob


if __name__ == "__main__":
    key = jax.random.PRNGKey(0)
    k_feat, k_par, k_lab = jax.random.split(key, 3)

    batch, input_size, hidden_size = 8, 32, 32
    features = jax.random.normal(k_feat, (batch, input_size), jnp.float32)
    params = init_params(k_par, input_size, hidden_size)

    lab_keys = jax.random.split(k_lab, len(NUM_LABELS_PER_CATEGORY))
    labels_list = [
        jax.random.bernoulli(lk, 0.5, (batch, nh)).astype(jnp.float32)
        for lk, nh in zip(lab_keys, NUM_LABELS_PER_CATEGORY)
    ]

    # Pure-JAX f32 reference for correctness checks.
    def reference(feats, prm, labels):
        xh = feats.astype(jnp.float32)
        hh = jnp.tanh(jnp.dot(xh, prm["wd"], precision=jax.lax.Precision.HIGHEST)
                      + prm["bd"])
        zz = jnp.dot(hh, prm["wo"], precision=jax.lax.Precision.HIGHEST) + prm["bo"]
        probs, loss = [], jnp.float32(0.0)
        for (off, nh), y in zip(HEAD_OFFSETS, labels):
            z = zz[:, off:off + nh]
            probs.append(jax.nn.softmax(z, axis=-1))
            per = jnp.maximum(z, 0.0) - z * y + jnp.log1p(jnp.exp(-jnp.abs(z)))
            loss = loss + jnp.mean(per)
        return probs, loss

    ref_probs, ref_loss = reference(features, params, labels_list)

    # Path 1: inference (default bf16 MXU path).
    probs = model_forward(features, params)
    probs = jax.block_until_ready(probs)
    assert len(probs) == len(NUM_LABELS_PER_CATEGORY)
    for p, (_, nh) in zip(probs, HEAD_OFFSETS):
        assert p.shape == (batch, nh)
    for p, r in zip(probs, ref_probs):
        assert float(jnp.max(jnp.abs(p - r))) < 2.5e-2

    # Path 2: training (fused BCE loss; logits never written to HBM).
    loss, probs2 = model_forward(features, params, labels_list)
    loss = jax.block_until_ready(loss)
    assert bool(jnp.isfinite(loss))
    assert float(jnp.abs(loss - ref_loss)) < 5e-2
    for p1, p2 in zip(probs, probs2):
        assert jnp.allclose(p1, p2, atol=1e-6)

    # Path 3: exact-f32 parity path (matches PyTorch `x.float()` semantics tightly).
    probs_f32 = model_forward(features, params, use_bf16=False)
    probs_f32 = jax.block_until_ready(probs_f32)
    for p, r in zip(probs_f32, ref_probs):
        assert float(jnp.max(jnp.abs(p - r))) < 1e-4

    # Softmax rows sum to 1 (Newton-refined reciprocal keeps this tight).
    for p in probs:
        assert jnp.allclose(jnp.sum(p, -1), 1.0, atol=1e-5)

    print("KERNEL_OK")
</pallas_src>

<mosaic_0001>
module attributes {stable_mosaic.version = 11 : i64} {
  func.func @_classifier_kernel(%arg0: i32, %arg1: memref<8x32xf32, #tpu.memory_space<vmem>>, %arg2: memref<32x32xbf16, #tpu.memory_space<vmem>>, %arg3: memref<1x32xf32, #tpu.memory_space<vmem>>, %arg4: memref<32x128xbf16, #tpu.memory_space<vmem>>, %arg5: memref<1x128xf32, #tpu.memory_space<vmem>>, %arg6: memref<128x128xf32, #tpu.memory_space<vmem>>, %arg7: memref<8x128xf32, #tpu.memory_space<vmem>>) attributes {dimension_semantics = [#tpu.dimension_semantics<parallel>], iteration_bounds = array<i64: 1>, scalar_prefetch = 0 : i64, scratch_operands = 0 : i64, tpu.core_type = #tpu.core_type<tc>, window_params = [{transform_indices = @transform_0, window_bounds = array<i64: 8, 32>}, {pipeline_mode = #tpu.pipeline_mode<synchronous>, transform_indices = @transform_1, window_bounds = array<i64: 32, 32>}, {pipeline_mode = #tpu.pipeline_mode<synchronous>, transform_indices = @transform_2, window_bounds = array<i64: 1, 32>}, {pipeline_mode = #tpu.pipeline_mode<synchronous>, transform_indices = @transform_3, window_bounds = array<i64: 32, 128>}, {pipeline_mode = #tpu.pipeline_mode<synchronous>, transform_indices = @transform_4, window_bounds = array<i64: 1, 128>}, {pipeline_mode = #tpu.pipeline_mode<synchronous>, transform_indices = @transform_5, window_bounds = array<i64: 128, 128>}, {transform_indices = @transform_6, window_bounds = array<i64: 8, 128>}]} {
    %c0 = arith.constant 0 : index
    %c0_0 = arith.constant 0 : index
    %0 = vector.load %arg1[%c0, %c0_0] : memref<8x32xf32, #tpu.memory_space<vmem>>, vector<8x32xf32>
    %1 = arith.truncf %0 : vector<8x32xf32> to vector<8x32xbf16>
    %c0_1 = arith.constant 0 : index
    %c0_2 = arith.constant 0 : index
    %2 = vector.load %arg2[%c0_1, %c0_2] : memref<32x32xbf16, #tpu.memory_space<vmem>>, vector<32x32xbf16>
    %cst = arith.constant dense<0.000000e+00> : vector<8x32xf32>
    %3 = tpu.matmul %1, %2, %cst {dimension_numbers = #tpu.dot_dimension_numbers<[1], [0], [0], [1], [0, 0, 1, 1], [], []>} : vector<8x32xbf16>, vector<32x32xbf16>, vector<8x32xf32> -> vector<8x32xf32>
    %c0_3 = arith.constant 0 : index
    %c0_4 = arith.constant 0 : index
    %4 = vector.load %arg3[%c0_3, %c0_4] : memref<1x32xf32, #tpu.memory_space<vmem>>, vector<1x32xf32>
    %5 = vector.broadcast %4 : vector<1x32xf32> to vector<8x32xf32>
    %6 = arith.addf %3, %5 : vector<8x32xf32>
    %7 = math.tanh %6 : vector<8x32xf32>
    %8 = arith.truncf %7 : vector<8x32xf32> to vector<8x32xbf16>
    %c0_5 = arith.constant 0 : index
    %c0_6 = arith.constant 0 : index
    %9 = vector.load %arg4[%c0_5, %c0_6] : memref<32x128xbf16, #tpu.memory_space<vmem>>, vector<32x128xbf16>
    %cst_7 = arith.constant dense<0.000000e+00> : vector<8x128xf32>
    %10 = tpu.matmul %8, %9, %cst_7 {dimension_numbers = #tpu.dot_dimension_numbers<[1], [0], [0], [1], [0, 0, 1, 1], [], []>} : vector<8x32xbf16>, vector<32x128xbf16>, vector<8x128xf32> -> vector<8x128xf32>
    %c0_8 = arith.constant 0 : index
    %c0_9 = arith.constant 0 : index
    %11 = vector.load %arg5[%c0_8, %c0_9] : memref<1x128xf32, #tpu.memory_space<vmem>>, vector<1x128xf32>
    %12 = vector.broadcast %11 : vector<1x128xf32> to vector<8x128xf32>
    %13 = arith.addf %10, %12 : vector<8x128xf32>
    %cst_10 = arith.constant dense<0xFF800000> : vector<8xf32>
    %14 = vector.multi_reduction <maximumf>, %13, %cst_10 [1] : vector<8x128xf32> to vector<8xf32>
    %15 = vector.shape_cast %14 : vector<8xf32> to vector<8x1xf32>
    %16 = vector.broadcast %15 : vector<8x1xf32> to vector<8x128xf32>
    %17 = arith.subf %13, %16 : vector<8x128xf32>
    %18 = math.exp %17 : vector<8x128xf32>
    %c0_11 = arith.constant 0 : index
    %c0_12 = arith.constant 0 : index
    %19 = vector.load %arg6[%c0_11, %c0_12] : memref<128x128xf32, #tpu.memory_space<vmem>>, vector<128x128xf32>
    %cst_13 = arith.constant dense<0.000000e+00> : vector<8x128xf32>
    %20 = tpu.matmul %18, %19, %cst_13 {dimension_numbers = #tpu.dot_dimension_numbers<[1], [0], [0], [1], [0, 0, 1, 1], [], []>} : vector<8x128xf32>, vector<128x128xf32>, vector<8x128xf32> -> vector<8x128xf32>
    %cst_14 = arith.constant 9.99999991E-38 : f32
    %21 = vector.broadcast %cst_14 : f32 to vector<8x128xf32>
    %22 = arith.maximumf %20, %21 : vector<8x128xf32>
    %23 = tpu.reciprocal %22 {approx = true} : vector<8x128xf32> -> vector<8x128xf32>
    %24 = arith.mulf %22, %23 : vector<8x128xf32>
    %cst_15 = arith.constant 2.000000e+00 : f32
    %25 = vector.broadcast %cst_15 : f32 to vector<8x128xf32>
    %26 = arith.subf %25, %24 : vector<8x128xf32>
    %27 = arith.mulf %23, %26 : vector<8x128xf32>
    %28 = arith.mulf %18, %27 : vector<8x128xf32>
    %c0_16 = arith.constant 0 : index
    %c0_17 = arith.constant 0 : index
    %29 = vector.load %arg7[%c0_16, %c0_17] : memref<8x128xf32, #tpu.memory_space<vmem>>, vector<8x128xf32>
    tpu.vector_store %arg7[%c0_16, %c0_17], %28 {strides = array<i32>} : memref<8x128xf32, #tpu.memory_space<vmem>>, vector<8x128xf32>,
    return
  }
  func.func @transform_0(%arg0: i32) -> (i32, i32) {
    %c0_i32 = arith.constant 0 : i32
    %c0_i32_0 = arith.constant 0 : i32
    return %arg0, %c0_i32 : i32, i32
  }
  func.func @transform_1(%arg0: i32) -> (i32, i32) {
    %c0_i32 = arith.constant 0 : i32
    %c0_i32_0 = arith.constant 0 : i32
    %c0_i32_1 = arith.constant 0 : i32
    return %c0_i32, %c0_i32_0 : i32, i32
  }
  func.func @transform_2(%arg0: i32) -> (i32, i32) {
    %c0_i32 = arith.constant 0 : i32
    %c0_i32_0 = arith.constant 0 : i32
    %c0_i32_1 = arith.constant 0 : i32
    return %c0_i32, %c0_i32_0 : i32, i32
  }
  func.func @transform_3(%arg0: i32) -> (i32, i32) {
    %c0_i32 = arith.constant 0 : i32
    %c0_i32_0 = arith.constant 0 : i32
    %c0_i32_1 = arith.constant 0 : i32
    return %c0_i32, %c0_i32_0 : i32, i32
  }
  func.func @transform_4(%arg0: i32) -> (i32, i32) {
    %c0_i32 = arith.constant 0 : i32
    %c0_i32_0 = arith.constant 0 : i32
    %c0_i32_1 = arith.constant 0 : i32
    return %c0_i32, %c0_i32_0 : i32, i32
  }
  func.func @transform_5(%arg0: i32) -> (i32, i32) {
    %c0_i32 = arith.constant 0 : i32
    %c0_i32_0 = arith.constant 0 : i32
    %c0_i32_1 = arith.constant 0 : i32
    return %c0_i32, %c0_i32_0 : i32, i32
  }
  func.func @transform_6(%arg0: i32) -> (i32, i32) {
    %c0_i32 = arith.constant 0 : i32
    %c0_i32_0 = arith.constant 0 : i32
    return %arg0, %c0_i32 : i32, i32
  }
}

</mosaic_0001>

<bundles_post_ra>
// kernel: _run_classifier.1
= control target key start
LH: loop header
LB: loop body
LE: loop exit
PB: predicated region body
PF: predicated region fallthrough
CT: control target
= control target key end

     0   :  { %v418_v1 = vmov 0.0   ;;  %vm419_vm0 = vmmov 0   ;;  %s540_s0 = inlined_call_operand.vmem [shape: f32[8,32], index: 0, kind: input, shape index: {}]   ;;  %s541_s1 = inlined_call_operand.vmem [shape: bf16[32,32], index: 1, kind: input, shape index: {}]   ;;  %s542_s2 = inlined_call_operand.vmem [shape: f32[1,32], index: 2, kind: input, shape index: {}]   ;;  %s543_s3 = inlined_call_operand.vmem [shape: bf16[32,128], index: 3, kind: input, shape index: {}]   ;;  %s544_s4 = inlined_call_operand.vmem [shape: f32[1,128], index: 4, kind: input, shape index: {}]   ;;  %s545_s5 = inlined_call_operand.vmem [shape: f32[128,128], index: 5, kind: input, shape index: {}]   ;;  %s546_s6 = inlined_call_operand.hbm [shape: f32[8,128], index: 6, kind: output, shape index: {}]  }
   0x1   :  { %v384_v0 = vld [vmem:[%s541_s1] sm:$0xff]   ;;  %305 = vmatprep.subr.bf16.mxu1 %v418_v1  ;;  %v385_v2 = vld [vmem:[%s541_s1 + $0x8] sm:$0xff]   ;;  %309 = vmatprep.mubr.msk.bf16.mxu1 %vm419_vm0, %v418_v1 }
   0x2   :  { %306 = vmatpush3.bf16.msra.mxu1 %v384_v0  ;;  %v25_v3 = vld [vmem:[%s540_s0] sm:$0xff]  ;;  %353 = vmatprep.mubr.msk.f32.mxu0 %vm419_vm0, %v418_v1 }
   0x3   :  { %307 = vmatprep.subr.bf16.mxu1 %v418_v1 }
   0x4   :  { %11 = vsyncpa [#allocation3], 0  ;;  %v26_v4 = vpack.c.bf16 %v25_v3, %v25_v3  ;;  %vm50_vm1 = vcmask 261120   ;;  %v386_v5 = vld [vmem:[%s543_s3] sm:$0xff]   ;;  %v387_v6 = vld [vmem:[%s543_s3 + $0x8] sm:$0xff]   ;;  %v420_v18 = vmov 0.0|0.0  }
   0x5   :  { %v274_v7 = vld [vmem:[%s542_s2] ss:$0 sm:$0xff]  ;;  %v168_v16 = vld [vmem:[%s545_s5 + $0x8] sm:$0xff]  ;;  %v169_v17 = vld [vmem:[%s545_s5 + $0x10] sm:$0xff]  ;;  %356 = vmatprep.subr.bf16.mxu0 %v420_v18  ;;  %s421_s2 = smov [#allocation2]  }
   0x6   :  { %308 = vmatpush3.bf16.msra.mxu1 %v385_v2  ;;  %v167_v15 = vld [vmem:[%s545_s5] sm:$0xff]  ;;  %v170_v20 = vld [vmem:[%s545_s5 + $0x18] sm:$0xff]  ;;  %v172_v23 = vld [vmem:[%s545_s5 + $0x28] sm:$0xff]  ;;  %s266_s11 = sshll.u32 %s421_s2, 4  ;;  %s267_s11 = int_to_ptr.vmem [resolvable:$true] %s266_s11 }
   0x7   :  { %313 = vmatprep.subr.bf16.mxu1 %v418_v1  ;;  %v357_v19 = vpack.c.bf16 %v168_v16, %v167_v15  ;;  %v360_v21 = vpack.c.bf16 %v170_v20, %v169_v17  ;;  %v171_v22 = vld [vmem:[%s545_s5 + $0x20] sm:$0xff]  ;;  %v173_v25 = vld [vmem:[%s545_s5 + $0x30] sm:$0xff]  ;;  %v174_v26 = vld [vmem:[%s545_s5 + $0x38] sm:$0xff]  ;;  %p399_p1 = scmp.lt.s32.totalorder %s267_s11, %s267_s11 }
   0x8   :  { %v363_v24 = vpack.c.bf16 %v172_v23, %v171_v22  ;;  %v366_v27 = vpack.c.bf16 %v174_v26, %v173_v25  ;;  %v278_v28 = vld [vmem:[%s544_s4] ss:$0 sm:$0xff]  ;;  %v176_v35 = vld [vmem:[%s545_s5 + $0x48] sm:$0xff]  ;;  %v177_v37 = vld [vmem:[%s545_s5 + $0x50] sm:$0xff] }
   0x9   :  { %310 = vmatmul.mubr.msk.bf16.vlgmr.msra.gmra.mrb[0].mxu1 %vm50_vm1, %v26_v4  ;;  %358 = vmatpush3.bf16.msra.mxu0 %v357_v19  ;;  %v175_v34 = vld [vmem:[%s545_s5 + $0x40] sm:$0xff]  ;;  %v178_v38 = vld [vmem:[%s545_s5 + $0x58] sm:$0xff]  ;;  %v180_v41 = vld [vmem:[%s545_s5 + $0x68] sm:$0xff] }
   0xa   :  { %317 = vmatprep.mubr.msk.bf16.mxu1 %vm419_vm0, %v418_v1  ;;  %314 = vmatpush3.bf16.msra.mxu1 %v386_v5  ;;  %v369_v36 = vpack.c.bf16 %v176_v35, %v175_v34  ;;  %v372_v39 = vpack.c.bf16 %v178_v38, %v177_v37  ;;  %v179_v40 = vld [vmem:[%s545_s5 + $0x60] sm:$0xff]  ;;  %v181_v43 = vld [vmem:[%s545_s5 + $0x70] sm:$0xff]  ;;  %v182_v44 = vld [vmem:[%s545_s5 + $0x78] sm:$0xff]  ;;  %s394_s5 = scalar_lea.vmem %s267_s11, 128 }
   0xb   :  { %315 = vmatprep.subr.bf16.mxu1 %v418_v1  ;;  %359 = vmatprep.subr.bf16.mxu0 %v420_v18  ;;  %v375_v42 = vpack.c.bf16 %v180_v41, %v179_v40  ;;  %v378_v45 = vpack.c.bf16 %v182_v44, %v181_v43  ;;  %p395_p0 = scmp.ne.s32.totalorder %s267_s11, %s394_s5  ;;  %p400_p2 = scmp.lt.s32.totalorder %s394_s5, %s394_s5 }
   0xd   :  { %361 = vmatpush3.bf16.msra.mxu0 %v360_v21  ;;  %p401_p3 = por %p400_p2, %p399_p1 }
   0xe   :  { %316 = vmatpush3.bf16.msra.mxu1 %v387_v6  ;;  %362 = vmatprep.subr.bf16.mxu0 %v420_v18 }
   0xf   :  { %p402_p4 = pnand %p401_p3, %p395_p0 }
  0x11   :  { %364 = vmatpush3.bf16.msra.mxu0 %v363_v24 }
  0x12   :  { %365 = vmatprep.subr.bf16.mxu0 %v420_v18 }
  0x15   :  { %367 = vmatpush3.bf16.msra.mxu0 %v366_v27 }
  0x16   :  { %368 = vmatprep.subr.bf16.mxu0 %v420_v18 }
  0x19   :  { %370 = vmatpush3.bf16.msra.mxu0 %v369_v36 }
  0x1a   :  { %371 = vmatprep.subr.bf16.mxu0 %v420_v18 }
  0x1d   :  { %373 = vmatpush3.bf16.msra.mxu0 %v372_v39 }
  0x1e   :  { %374 = vmatprep.subr.bf16.mxu0 %v420_v18 }
  0x21   :  { %376 = vmatpush3.bf16.msra.mxu0 %v375_v42 }
  0x22   :  { %377 = vmatprep.subr.bf16.mxu0 %v420_v18 }
  0x25   :  { %379 = vmatpush3.bf16.msra.mxu0 %v378_v45 }
  0xdc   :  { %v88_v8 = vpop.f32.mrb[0].mxu1 }
  0xdd   :  { %v89_v9 = vadd.f32 %v274_v7, %v88_v8  ;;  %v311_v10 = vpop.f32.mrb[1].mxu1 }
  0xde   :  { %v91_v11 = vpop.f32.mrb[2].mxu1 }
  0xdf   :  { %388 = vtanh.f32 %v89_v9  ;;  %v312_v12 = vpop.f32.mrb[3].mxu1 }
  0xe9   :  { %v389_v13 = vpop.eup %388 }
  0xea   :  { %v95_v14 = vpack.c.bf16 %v389_v13, %v389_v13 }
  0xec   :  { %318 = vmatmul.mubr.msk.bf16.vlgmr.msra.gmra.mrb[4].mxu1 %vm50_vm1, %v95_v14 }
 0x1bf   :  { %v156_v29 = vpop.f32.mrb[4].mxu1 }
 0x1c0   :  { %v157_v30 = vadd.f32 %v278_v28, %v156_v29  ;;  %v319_v31 = vpop.f32.mrb[5].mxu1 }
 0x1c1   :  { %v159_v32 = vpop.f32.mrb[6].mxu1 }
 0x1c2   :  { %v320_v33 = vpop.f32.mrb[7].mxu1  ;;  %162 = vmax.xlane.f32.xlu0 %v157_v30 }
 0x24f   :  { %v163_v46 = vpop.xlane.xlu0 %162 }
 0x250   :  { %v164_v47 = vsub.f32 %v157_v30, %v163_v46 }
 0x252   :  { %v165_v48 = vmul.f32 1.442695, %v164_v47 }
 0x254   :  { %390 = vpow2.f32 %v165_v48 }
 0x25e   :  { %v391_v49 = vpop.eup %390 }
 0x25f   :  { %354 = vmatmul.mubr.f32.vlgmr.msra.gmra.mrb[0].mxu0 %v391_v49 }
 0x332   :  { %v249_v50 = vpop.f32.mrb[0].mxu0 }
 0x333   :  { %v253_v51 = vmax.f32 %v249_v50, 1e-37  ;;  %v355_v52 = vpop.f32.mrb[1].mxu0 }
 0x335   :  { %392 = vrcp.f32 %v253_v51 }
 0x33f   :  { %v393_v53 = vpop.eup %392 }
 0x340   :  { %v255_v54 = vmul.f32 %v393_v53, %v253_v51 }
 0x342   :  { %v256_v55 = vsub.f32 2.0, %v255_v54 }
 0x344   :  { %v257_v56 = vmul.f32 %v393_v53, %v256_v55 }
 0x346   :  { %v258_v57 = vmul.f32 %v391_v49, %v257_v56 }
 0x348   :  { %259 = vst [vmem:[#allocation2] sm:$0xff] %v258_v57 }
 0x349   :  { %405 = shalt.err (!%p402_p4)
}
 0x34a   :  { %s406_s14 = scalar_lea.hbm %s546_s6, 128 }
 0x34b   :  { %p407_p5 = scmp.ne.s32.totalorder %s546_s6, %s406_s14  ;;  %p410_p6 = scmp.lt.u32.totalorder %s406_s14, %s546_s6 }
 0x34d   :  { %p412_p7 = pnand %p410_p6, %p407_p5 }
 0x34f   :  { %415 = shalt.err (!%p412_p7)
}
 0x350   :  { %269 = dma.vmem_to_hbm [thread:$0]  %s267_s11, 128, %s546_s6, [#allocation3]  }
 0x351   :  { %416 = dma.done.wait [#allocation3], 128  }
 0x352   :  { %417 = vsyncadd [#allocation3], 4294967168 }
 0x353   :  { %273 = vsyncpa [#allocation3], 1 }

</bundles_post_ra>
